<compile_context>
chip_gen: v5e
topology: v5e:2x2
jax: 0.10.0
libtpu: 0.0.40
codegen_flags: <defaults>
</compile_context>

<pallas_src>
import functools

import jax
import jax.numpy as jnp
from jax.experimental import pallas as pl
from jax.experimental.pallas import tpu as pltpu


def _round_up(x: int, m: int) -> int:
    return (x + m - 1) // m * m


def _vmem_cap_bytes() -> int:
    """Physical VMEM per TensorCore; falls back to the v7x worst case (64 MiB)."""
    try:
        cap = int(pltpu.get_tpu_info().vmem_capacity_bytes)
        if cap > 0:
            return cap
    except Exception:
        pass
    return 64 * 1024 * 1024


def _embedding_perceptron_kernel(ids_ref, tab_ref, b_ref, out_ref, *,
                                 apply_softmax: bool):
    TB, S = ids_ref.shape          # batch tile, sentence length
    SV, C_pad = tab_ref.shape      # fused (position, vocab) dim, padded class dim
    V = SV // S

    ids = ids_ref[...]                                               # (TB, S) int32
    lane = jax.lax.broadcasted_iota(jnp.int32, (TB, SV), 1)          # flat (s, v) lane index

    # one_hot[b, s*V + v] = (ids[b, s] == v).  Position segments are disjoint, so OR-ing
    # the S per-position hits assembles the full selector without cross-lane relayout.
    hit = lane == ids[:, 0:1]
    for s in range(1, S):                                            # static unroll, S small
        hit = jnp.logical_or(hit, lane == (ids[:, s:s + 1] + s * V))
    one_hot = hit.astype(tab_ref.dtype)                              # (TB, S*V)

    # Single MXU matmul: K = S*V, N = C_pad (128-aligned); f32 accumulation.
    logits = jnp.dot(one_hot, tab_ref[...],
                     preferred_element_type=jnp.float32) + b_ref[...]

    if apply_softmax:
        m = jnp.max(logits, axis=-1, keepdims=True)
        e = jnp.exp(logits - m)                      # padded lanes: exp(-1e30 - m) == 0
        denom = jnp.sum(e, axis=-1, keepdims=True)
        # Exact divide: pl.reciprocal(approx=True) has ~1e-3 rel. error (failed check).
        out_ref[...] = (e / denom).astype(out_ref.dtype)
    else:
        out_ref[...] = logits.astype(out_ref.dtype)


def fuse_params(embed, w_t, bias, *, compute_dtype=jnp.float32):
    """One-time parameter prep: fuse embedding + linear, pad to lane-dense layout.

    embed : (V, E)   f32  (nn.Embedding.weight)
    w_t   : (S*E, C) f32  (transposed nn.Linear.weight)
    bias  : (1, C)   f32
    returns (table_pad (S*V, C_pad), bias_pad (1, C_pad))
    """
    V, E = embed.shape
    SE, C = w_t.shape
    S = SE // E
    assert S * E == SE
    C_pad = _round_up(C, 128)

    w3 = w_t.astype(jnp.float32).reshape(S, E, C)
    # T[s*V + v, c] = sum_e embed[v, e] * w_t[s*E + e, c]
    table = jnp.einsum("ve,sec->svc", embed.astype(jnp.float32), w3,
                       precision=jax.lax.Precision.HIGHEST).reshape(S * V, C)
    table_pad = jnp.zeros((S * V, C_pad), jnp.float32).at[:, :C].set(table)
    table_pad = table_pad.astype(compute_dtype)

    # -1e30 in padded lanes -> exp() == 0 under softmax; sliced off for logits anyway.
    bias_pad = jnp.full((1, C_pad), -1e30, jnp.float32).at[:, :C].set(
        bias.astype(jnp.float32).reshape(1, C))
    return table_pad, bias_pad


@functools.partial(jax.jit, static_argnames=("nb_classes", "apply_softmax",
                                             "batch_tile", "out_dtype"))
def embedding_perceptron_fused(ids, table_pad, bias_pad, *, nb_classes,
                               apply_softmax=True, batch_tile=None,
                               out_dtype=jnp.float32):
    """Forward pass given pre-fused parameters from fuse_params().  Returns (B, C)."""
    B, S = ids.shape
    SV, C_pad = table_pad.shape
    C = nb_classes

    # Batch tile: sublane-aligned, <= 256 for vreg pressure, >= 2 grid steps when B allows.
    if batch_tile is None:
        TB = min(256, _round_up(max(-(-B // 2), 1), 8))
    else:
        TB = _round_up(batch_tile, 8)
    B_pad = _round_up(B, TB)
    ids_p = ids if B_pad == B else jnp.zeros((B_pad, S), ids.dtype).at[:B].set(ids)

    # Scoped-VMEM limit: per-tile operands (double-buffered), params (conservatively 2x),
    # in-kernel temporaries, plus slack; capped at 75% of physical VMEM per TensorCore.
    tab_item = jnp.dtype(table_pad.dtype).itemsize
    out_item = jnp.dtype(out_dtype).itemsize
    tile_bytes = 2 * (TB * S * 4) + 2 * (TB * C_pad * out_item)
    param_bytes = 2 * (SV * C_pad * tab_item + C_pad * 4)
    scratch_bytes = TB * SV * (4 + tab_item) + TB * C_pad * 4
    need = tile_bytes + param_bytes + scratch_bytes + (2 << 20)
    cap = int(0.75 * _vmem_cap_bytes())
    vmem_limit = min(cap, max(32 * 1024 * 1024, need))

    kernel = functools.partial(_embedding_perceptron_kernel,
                               apply_softmax=apply_softmax)
    out = pl.pallas_call(
        kernel,
        out_shape=jax.ShapeDtypeStruct((B_pad, C_pad), out_dtype),
        grid=(B_pad // TB,),
        in_specs=[
            pl.BlockSpec((TB, S), lambda i: (i, 0)),        # ids tile
            pl.BlockSpec((SV, C_pad), lambda i: (0, 0)),    # fused embed@W table
            pl.BlockSpec((1, C_pad), lambda i: (0, 0)),     # padded bias
        ],
        out_specs=pl.BlockSpec((TB, C_pad), lambda i: (i, 0)),
        compiler_params=pltpu.CompilerParams(
            dimension_semantics=("parallel",),
            vmem_limit_bytes=int(vmem_limit)),
    )(ids_p, table_pad, bias_pad)

    return out[:B, :C]


def embedding_perceptron(ids, embed, w_t, bias, *, apply_softmax=True,
                         batch_tile=None, compute_dtype=jnp.float32,
                         out_dtype=jnp.float32):
    """Convenience wrapper.  Prefer calling fuse_params() once at setup and reusing
    embedding_perceptron_fused() per forward pass."""
    _, C = w_t.shape
    table_pad, bias_pad = fuse_params(embed, w_t, bias, compute_dtype=compute_dtype)
    return embedding_perceptron_fused(ids, table_pad, bias_pad, nb_classes=C,
                                      apply_softmax=apply_softmax,
                                      batch_tile=batch_tile, out_dtype=out_dtype)


def _xavier_normal(key, shape):
    # torch.nn.init.xavier_normal_: std = sqrt(2 / (fan_in + fan_out)).
    fan_out, fan_in = shape
    std = (2.0 / (fan_in + fan_out)) ** 0.5
    return std * jax.random.normal(key, shape, dtype=jnp.float32)


if __name__ == "__main__":
    # Small shapes consistent with the module.
    vocabulary_len = 64
    sentence_size = 8
    embedding_size = 16
    nb_classes = 4
    batch = 2

    key = jax.random.PRNGKey(0)
    k_ids, k_emb, k_w, k_b = jax.random.split(key, 4)

    # Inputs: token ids (B, S).
    ids = jax.random.randint(k_ids, (batch, sentence_size), 0, vocabulary_len,
                             dtype=jnp.int32)

    # Parameters (deterministic, mirroring the module's __init__).
    embed = _xavier_normal(k_emb, (vocabulary_len, embedding_size))        # nn.Embedding.weight
    w = _xavier_normal(k_w, (nb_classes, sentence_size * embedding_size))  # nn.Linear.weight
    fan_in = sentence_size * embedding_size
    bound = 1.0 / (fan_in ** 0.5)
    bias = jax.random.uniform(k_b, (1, nb_classes), minval=-bound, maxval=bound,
                              dtype=jnp.float32)                           # nn.Linear.bias
    w_t = jnp.transpose(w)                                                 # (S*E, C)

    # Pure-JAX reference (matches the torch forward).
    ref_x = embed[ids].reshape(batch, -1)
    ref_logits = ref_x @ w_t + bias
    ref_probs = jax.nn.softmax(ref_logits, axis=-1)

    # Fuse / pad parameters once (hoisted out of the per-call path).
    table_pad, bias_pad = fuse_params(embed, w_t, bias)

    logits = jax.block_until_ready(
        embedding_perceptron_fused(ids, table_pad, bias_pad, nb_classes=nb_classes,
                                   apply_softmax=False))
    probs = jax.block_until_ready(
        embedding_perceptron_fused(ids, table_pad, bias_pad, nb_classes=nb_classes,
                                   apply_softmax=True))

    assert logits.shape == (batch, nb_classes)
    assert probs.shape == (batch, nb_classes)
    assert jnp.allclose(logits, ref_logits, atol=1e-5, rtol=1e-5), "logits mismatch"
    assert jnp.allclose(probs, ref_probs, atol=1e-4, rtol=1e-4), "softmax mismatch"
    assert jnp.allclose(jnp.sum(probs, axis=-1), 1.0, atol=1e-5), "softmax not normalized"

    print("KERNEL_OK")
</pallas_src>

<mosaic_0001>
module attributes {stable_mosaic.version = 11 : i64} {
  func.func @_embedding_perceptron_kernel(%arg0: i32, %arg1: memref<8x8xi32, #tpu.memory_space<vmem>>, %arg2: memref<512x128xf32, #tpu.memory_space<vmem>>, %arg3: memref<1x128xf32, #tpu.memory_space<vmem>>, %arg4: memref<8x128xf32, #tpu.memory_space<vmem>>) attributes {dimension_semantics = [#tpu.dimension_semantics<parallel>], iteration_bounds = array<i64: 1>, scalar_prefetch = 0 : i64, scratch_operands = 0 : i64, tpu.core_type = #tpu.core_type<tc>, window_params = [{transform_indices = @transform_0, window_bounds = array<i64: 8, 8>}, {pipeline_mode = #tpu.pipeline_mode<synchronous>, transform_indices = @transform_1, window_bounds = array<i64: 512, 128>}, {pipeline_mode = #tpu.pipeline_mode<synchronous>, transform_indices = @transform_2, window_bounds = array<i64: 1, 128>}, {transform_indices = @transform_3, window_bounds = array<i64: 8, 128>}]} {
    %c0 = arith.constant 0 : index
    %c0_0 = arith.constant 0 : index
    %0 = vector.load %arg1[%c0, %c0_0] : memref<8x8xi32, #tpu.memory_space<vmem>>, vector<8x8xi32>
    %1 = tpu.iota {dimensions = array<i32: 1>} : vector<8x512xi32>
    %2 = vector.extract_strided_slice %0 {offsets = [0, 0], sizes = [8, 1], strides = [1, 1]} : vector<8x8xi32> to vector<8x1xi32>
    %3 = vector.broadcast %2 : vector<8x1xi32> to vector<8x512xi32>
    %4 = arith.cmpi eq, %1, %3 : vector<8x512xi32>
    %5 = vector.extract_strided_slice %0 {offsets = [0, 1], sizes = [8, 1], strides = [1, 1]} : vector<8x8xi32> to vector<8x1xi32>
    %c64_i32 = arith.constant 64 : i32
    %6 = vector.broadcast %c64_i32 : i32 to vector<8x1xi32>
    %7 = arith.addi %5, %6 : vector<8x1xi32>
    %8 = vector.broadcast %7 : vector<8x1xi32> to vector<8x512xi32>
    %9 = arith.cmpi eq, %1, %8 : vector<8x512xi32>
    %10 = arith.ori %4, %9 : vector<8x512xi1>
    %11 = vector.extract_strided_slice %0 {offsets = [0, 2], sizes = [8, 1], strides = [1, 1]} : vector<8x8xi32> to vector<8x1xi32>
    %c128_i32 = arith.constant 128 : i32
    %12 = vector.broadcast %c128_i32 : i32 to vector<8x1xi32>
    %13 = arith.addi %11, %12 : vector<8x1xi32>
    %14 = vector.broadcast %13 : vector<8x1xi32> to vector<8x512xi32>
    %15 = arith.cmpi eq, %1, %14 : vector<8x512xi32>
    %16 = arith.ori %10, %15 : vector<8x512xi1>
    %17 = vector.extract_strided_slice %0 {offsets = [0, 3], sizes = [8, 1], strides = [1, 1]} : vector<8x8xi32> to vector<8x1xi32>
    %c192_i32 = arith.constant 192 : i32
    %18 = vector.broadcast %c192_i32 : i32 to vector<8x1xi32>
    %19 = arith.addi %17, %18 : vector<8x1xi32>
    %20 = vector.broadcast %19 : vector<8x1xi32> to vector<8x512xi32>
    %21 = arith.cmpi eq, %1, %20 : vector<8x512xi32>
    %22 = arith.ori %16, %21 : vector<8x512xi1>
    %23 = vector.extract_strided_slice %0 {offsets = [0, 4], sizes = [8, 1], strides = [1, 1]} : vector<8x8xi32> to vector<8x1xi32>
    %c256_i32 = arith.constant 256 : i32
    %24 = vector.broadcast %c256_i32 : i32 to vector<8x1xi32>
    %25 = arith.addi %23, %24 : vector<8x1xi32>
    %26 = vector.broadcast %25 : vector<8x1xi32> to vector<8x512xi32>
    %27 = arith.cmpi eq, %1, %26 : vector<8x512xi32>
    %28 = arith.ori %22, %27 : vector<8x512xi1>
    %29 = vector.extract_strided_slice %0 {offsets = [0, 5], sizes = [8, 1], strides = [1, 1]} : vector<8x8xi32> to vector<8x1xi32>
    %c320_i32 = arith.constant 320 : i32
    %30 = vector.broadcast %c320_i32 : i32 to vector<8x1xi32>
    %31 = arith.addi %29, %30 : vector<8x1xi32>
    %32 = vector.broadcast %31 : vector<8x1xi32> to vector<8x512xi32>
    %33 = arith.cmpi eq, %1, %32 : vector<8x512xi32>
    %34 = arith.ori %28, %33 : vector<8x512xi1>
    %35 = vector.extract_strided_slice %0 {offsets = [0, 6], sizes = [8, 1], strides = [1, 1]} : vector<8x8xi32> to vector<8x1xi32>
    %c384_i32 = arith.constant 384 : i32
    %36 = vector.broadcast %c384_i32 : i32 to vector<8x1xi32>
    %37 = arith.addi %35, %36 : vector<8x1xi32>
    %38 = vector.broadcast %37 : vector<8x1xi32> to vector<8x512xi32>
    %39 = arith.cmpi eq, %1, %38 : vector<8x512xi32>
    %40 = arith.ori %34, %39 : vector<8x512xi1>
    %41 = vector.extract_strided_slice %0 {offsets = [0, 7], sizes = [8, 1], strides = [1, 1]} : vector<8x8xi32> to vector<8x1xi32>
    %c448_i32 = arith.constant 448 : i32
    %42 = vector.broadcast %c448_i32 : i32 to vector<8x1xi32>
    %43 = arith.addi %41, %42 : vector<8x1xi32>
    %44 = vector.broadcast %43 : vector<8x1xi32> to vector<8x512xi32>
    %45 = arith.cmpi eq, %1, %44 : vector<8x512xi32>
    %46 = arith.ori %40, %45 : vector<8x512xi1>
    %47 = arith.extui %46 : vector<8x512xi1> to vector<8x512xi32>
    %48 = arith.sitofp %47 : vector<8x512xi32> to vector<8x512xf32>
    %c0_1 = arith.constant 0 : index
    %c0_2 = arith.constant 0 : index
    %49 = vector.load %arg2[%c0_1, %c0_2] : memref<512x128xf32, #tpu.memory_space<vmem>>, vector<512x128xf32>
    %cst = arith.constant dense<0.000000e+00> : vector<8x128xf32>
    %50 = tpu.matmul %48, %49, %cst {dimension_numbers = #tpu.dot_dimension_numbers<[1], [0], [0], [1], [0, 0, 1, 1], [], []>} : vector<8x512xf32>, vector<512x128xf32>, vector<8x128xf32> -> vector<8x128xf32>
    %c0_3 = arith.constant 0 : index
    %c0_4 = arith.constant 0 : index
    %51 = vector.load %arg3[%c0_3, %c0_4] : memref<1x128xf32, #tpu.memory_space<vmem>>, vector<1x128xf32>
    %52 = vector.broadcast %51 : vector<1x128xf32> to vector<8x128xf32>
    %53 = arith.addf %50, %52 : vector<8x128xf32>
    %c0_5 = arith.constant 0 : index
    %c0_6 = arith.constant 0 : index
    %54 = vector.load %arg4[%c0_5, %c0_6] : memref<8x128xf32, #tpu.memory_space<vmem>>, vector<8x128xf32>
    tpu.vector_store %arg4[%c0_5, %c0_6], %53 {strides = array<i32>} : memref<8x128xf32, #tpu.memory_space<vmem>>, vector<8x128xf32>,
    return
  }
  func.func @transform_0(%arg0: i32) -> (i32, i32) {
    %c0_i32 = arith.constant 0 : i32
    %c0_i32_0 = arith.constant 0 : i32
    return %arg0, %c0_i32 : i32, i32
  }
  func.func @transform_1(%arg0: i32) -> (i32, i32) {
    %c0_i32 = arith.constant 0 : i32
    %c0_i32_0 = arith.constant 0 : i32
    %c0_i32_1 = arith.constant 0 : i32
    return %c0_i32, %c0_i32_0 : i32, i32
  }
  func.func @transform_2(%arg0: i32) -> (i32, i32) {
    %c0_i32 = arith.constant 0 : i32
    %c0_i32_0 = arith.constant 0 : i32
    %c0_i32_1 = arith.constant 0 : i32
    return %c0_i32, %c0_i32_0 : i32, i32
  }
  func.func @transform_3(%arg0: i32) -> (i32, i32) {
    %c0_i32 = arith.constant 0 : i32
    %c0_i32_0 = arith.constant 0 : i32
    return %arg0, %c0_i32 : i32, i32
  }
}

</mosaic_0001>

<bundles_post_ra>
// kernel: embedding_perceptron_fused.1
= control target key start
LH: loop header
LB: loop body
LE: loop exit
PB: predicated region body
PF: predicated region fallthrough
CT: control target
= control target key end

     0   :  { %8 = vsyncpa [#allocation3], 0  ;;  %s341_s15 = smov [#allocation2]   ;;  %s342_s17 = smov 128   ;;  %s431_s0 = inlined_call_operand.vmem [shape: s32[8,8], index: 0, kind: input, shape index: {}]   ;;  %s432_s1 = inlined_call_operand.hbm [shape: f32[512,128], index: 1, kind: input, shape index: {}]   ;;  %s433_s2 = inlined_call_operand.vmem [shape: f32[1,128], index: 2, kind: input, shape index: {}]   ;;  %s434_s3 = inlined_call_operand.vmem [shape: f32[8,128], index: 3, kind: output, shape index: {}]  }
   0x1   :  { %s15_s14 = sshll.u32 %s432_s1, 4  ;;  %s17_s16 = sshll.u32 %s341_s15, 4  ;;  %s16_s14 = int_to_ptr.hbm [resolvable:$true] %s15_s14  ;;  %s18_s16 = int_to_ptr.vmem [resolvable:$true] %s17_s16 }
   0x2   :  { %s343_s18 = smov 8  }
   0x3   :  { %23 = dma.hbm_to_vmem [thread:$0]  %s16_s14, 8192, %s18_s16, [#allocation3], %s342_s17, %s342_s17, %s343_s18  }
   0x4   :  { %339 = dma.done.wait [#allocation3], 8192  }
   0x5   :  { %340 = vsyncadd [#allocation3], 4294959104  ;;  %v344_v0 = vmov 0   ;;  %v345_v1 = vmov 2   ;;  %v346_v2 = vmov 4   ;;  %v30_v3 = vld [vmem:[%s431_s0] sm:$0xff] }
   0x6   :  { %305 = vset.pattern.permute.xlu0 %v344_v0  ;;  %307 = vset.pattern.permute.xlu1 %v345_v1  ;;  %v150_v4 = vld [vmem:[#allocation2 + $0x78] sm:$0xff]  ;;  %v55_v6 = vadd.s32 128, %v30_v3  ;;  %v79_v9 = vadd.s32 256, %v30_v3  ;;  %v149_v10 = vld [vmem:[#allocation2 + $0x70] sm:$0xff]  ;;  %v148_v14 = vld [vmem:[#allocation2 + $0x68] sm:$0xff]  ;;  %v43_v19 = vadd.s32 64, %v30_v3 }
   0x7   :  { %309 = vset.pattern.permute.xlu2 %v346_v2  ;;  %v166_v5 = vld [vmem:[#allocation2 + $0xf8] sm:$0xff]  ;;  %37 = vperm.xlu0 %305, %v30_v3   ;;  %v165_v11 = vld [vmem:[#allocation2 + $0xf0] sm:$0xff]  ;;  %v164_v15 = vld [vmem:[#allocation2 + $0xe8] sm:$0xff]  ;;  %v67_v22 = vadd.s32 192, %v30_v3  ;;  %v347_v24 = vmov 1   ;;  %v91_v25 = vadd.s32 320, %v30_v3 }
   0x8   :  { %203 = vmatpush.msra.mxu0 %v150_v4  ;;  %v182_v7 = vld [vmem:[#allocation2 + $0x178] sm:$0xff]  ;;  %223 = vmatpush.msra.mxu1 %v166_v5  ;;  %v181_v12 = vld [vmem:[#allocation2 + $0x170] sm:$0xff]  ;;  %v180_v16 = vld [vmem:[#allocation2 + $0x168] sm:$0xff]  ;;  %v348_v26 = vmov 3   ;;  %v349_v27 = vmov 5   ;;  %v103_v28 = vadd.s32 384, %v30_v3 }
   0x9   :  { %v198_v8 = vld [vmem:[#allocation2 + $0x1f8] sm:$0xff]  ;;  %243 = vmatpush.msra.mxu2 %v182_v7  ;;  %57 = vperm.xlu1 %307, %v55_v6   ;;  %v197_v13 = vld [vmem:[#allocation2 + $0x1f0] sm:$0xff]  ;;  %v196_v17 = vld [vmem:[#allocation2 + $0x1e8] sm:$0xff]  ;;  %v115_v29 = vadd.s32 448, %v30_v3  ;;  %v350_v30 = vmov 7   ;;  %v351_v31 = vmov 6  }
   0xa   :  { %263 = vmatpush.msra.mxu3 %v198_v8  ;;  %81 = vperm.xlu2 %309, %v79_v9   ;;  %v147_v18 = vld [vmem:[#allocation2 + $0x60] sm:$0xff]  ;;  %v146_v32 = vld [vmem:[#allocation2 + $0x58] sm:$0xff]  ;;  %v145_v36 = vld [vmem:[#allocation2 + $0x50] sm:$0xff] }
   0xb   :  { %204 = vmatpush.msra.mxu0 %v149_v10  ;;  %224 = vmatpush.msra.mxu1 %v165_v11  ;;  %v163_v20 = vld [vmem:[#allocation2 + $0xe0] sm:$0xff]  ;;  %v162_v33 = vld [vmem:[#allocation2 + $0xd8] sm:$0xff]  ;;  %v161_v37 = vld [vmem:[#allocation2 + $0xd0] sm:$0xff] }
   0xc   :  { %244 = vmatpush.msra.mxu2 %v181_v12  ;;  %264 = vmatpush.msra.mxu3 %v197_v13  ;;  %v179_v21 = vld [vmem:[#allocation2 + $0x160] sm:$0xff]  ;;  %v178_v34 = vld [vmem:[#allocation2 + $0x158] sm:$0xff]  ;;  %v177_v38 = vld [vmem:[#allocation2 + $0x150] sm:$0xff] }
   0xd   :  { %205 = vmatpush.msra.mxu0 %v148_v14  ;;  %225 = vmatpush.msra.mxu1 %v164_v15  ;;  %v195_v23 = vld [vmem:[#allocation2 + $0x1e0] sm:$0xff]  ;;  %v194_v35 = vld [vmem:[#allocation2 + $0x1d8] sm:$0xff]  ;;  %v193_v39 = vld [vmem:[#allocation2 + $0x1d0] sm:$0xff] }
   0xe   :  { %245 = vmatpush.msra.mxu2 %v180_v16  ;;  %265 = vmatpush.msra.mxu3 %v196_v17  ;;  %v144_v40 = vld [vmem:[#allocation2 + $0x48] sm:$0xff]  ;;  %v143_v44 = vld [vmem:[#allocation2 + $0x40] sm:$0xff]  ;;  %v142_v48 = vld [vmem:[#allocation2 + $0x38] sm:$0xff] }
   0xf   :  { %206 = vmatpush.msra.mxu0 %v147_v18  ;;  %306 = vset.pattern.permute.xlu0 %v347_v24  ;;  %v160_v41 = vld [vmem:[#allocation2 + $0xc8] sm:$0xff]  ;;  %v159_v45 = vld [vmem:[#allocation2 + $0xc0] sm:$0xff]  ;;  %v158_v49 = vld [vmem:[#allocation2 + $0xb8] sm:$0xff]  ;;  %v31_v18 = vlaneseq }
  0x10   :  { %226 = vmatpush.msra.mxu1 %v163_v20  ;;  %45 = vperm.xlu0 %306, %v43_v19   ;;  %v176_v42 = vld [vmem:[#allocation2 + $0x148] sm:$0xff]  ;;  %v175_v46 = vld [vmem:[#allocation2 + $0x140] sm:$0xff]  ;;  %v174_v50 = vld [vmem:[#allocation2 + $0x138] sm:$0xff] }
  0x11   :  { %246 = vmatpush.msra.mxu2 %v179_v21  ;;  %308 = vset.pattern.permute.xlu1 %v348_v26  ;;  %v192_v43 = vld [vmem:[#allocation2 + $0x1c8] sm:$0xff]  ;;  %v191_v47 = vld [vmem:[#allocation2 + $0x1c0] sm:$0xff]  ;;  %v190_v51 = vld [vmem:[#allocation2 + $0x1b8] sm:$0xff]  ;;  %v32_v20 = vand.u32 127, %v31_v18 }
  0x12   :  { %266 = vmatpush.msra.mxu3 %v195_v23  ;;  %69 = vperm.xlu1 %308, %v67_v22   ;;  %v141_v52 = vld [vmem:[#allocation2 + $0x30] sm:$0xff]  ;;  %v140_v56 = vld [vmem:[#allocation2 + $0x28] sm:$0xff]  ;;  %v139_v60 = vld [vmem:[#allocation2 + $0x20] sm:$0xff] }
  0x13   :  { %310 = vset.pattern.permute.xlu2 %v349_v27  ;;  %207 = vmatpush.msra.mxu0 %v146_v32  ;;  %v157_v53 = vld [vmem:[#allocation2 + $0xb0] sm:$0xff]  ;;  %v156_v57 = vld [vmem:[#allocation2 + $0xa8] sm:$0xff]  ;;  %v155_v61 = vld [vmem:[#allocation2 + $0xa0] sm:$0xff]  ;;  %v33_v22 = vadd.s32 128, %v32_v20  ;;  %v34_v23 = vadd.s32 256, %v32_v20  ;;  %v435_v27 = vmov 0 }
  0x14   :  { %93 = vperm.xlu2 %310, %v91_v25   ;;  %227 = vmatpush.msra.mxu1 %v162_v33  ;;  %v173_v54 = vld [vmem:[#allocation2 + $0x130] sm:$0xff]  ;;  %v172_v58 = vld [vmem:[#allocation2 + $0x128] sm:$0xff]  ;;  %v171_v62 = vld [vmem:[#allocation2 + $0x120] sm:$0xff]  ;;  %v383_v25 = vadd.s32 384, %v32_v20  ;;  %v442_v32 = vmov 0  ;;  %v352_v33 = vmov 0.0  }
  0x15   :  { %247 = vmatpush.msra.mxu2 %v178_v34  ;;  %267 = vmatpush.msra.mxu3 %v194_v35  ;;  %v189_v55 = vld [vmem:[#allocation2 + $0x1b0] sm:$0xff]  ;;  %v188_v59 = vld [vmem:[#allocation2 + $0x1a8] sm:$0xff]  ;;  %v187_v63 = vld [vmem:[#allocation2 + $0x1a0] sm:$0xff] }
  0x16   :  { %208 = vmatpush.msra.mxu0 %v145_v36  ;;  %228 = vmatpush.msra.mxu1 %v161_v37  ;;  %v138_v0 = vld [vmem:[#allocation2 + $0x18] sm:$0xff]  ;;  %v137_v4 = vld [vmem:[#allocation2 + $0x10] sm:$0xff]  ;;  %v136_v8 = vld [vmem:[#allocation2 + $0x8] sm:$0xff] }
  0x17   :  { %248 = vmatpush.msra.mxu2 %v177_v38  ;;  %268 = vmatpush.msra.mxu3 %v193_v39  ;;  %v154_v1 = vld [vmem:[#allocation2 + $0x98] sm:$0xff]  ;;  %v153_v5 = vld [vmem:[#allocation2 + $0x90] sm:$0xff]  ;;  %v152_v9 = vld [vmem:[#allocation2 + $0x88] sm:$0xff] }
  0x18   :  { %313 = vset.pattern.permute.xlu0 %v350_v30  ;;  %209 = vmatpush.msra.mxu0 %v144_v40  ;;  %v170_v2 = vld [vmem:[#allocation2 + $0x118] sm:$0xff]  ;;  %v169_v6 = vld [vmem:[#allocation2 + $0x110] sm:$0xff]  ;;  %v168_v10 = vld [vmem:[#allocation2 + $0x108] sm:$0xff] }
  0x19   :  { %229 = vmatpush.msra.mxu1 %v160_v41  ;;  %249 = vmatpush.msra.mxu2 %v176_v42  ;;  %v186_v3 = vld [vmem:[#allocation2 + $0x198] sm:$0xff]  ;;  %v185_v7 = vld [vmem:[#allocation2 + $0x190] sm:$0xff]  ;;  %v184_v11 = vld [vmem:[#allocation2 + $0x188] sm:$0xff] }
  0x1a   :  { %311 = vset.pattern.permute.xlu1 %v351_v31  ;;  %269 = vmatpush.msra.mxu3 %v192_v43  ;;  %v135_v12 = vld [vmem:[#allocation2] sm:$0xff] }
  0x1b   :  { %105 = vperm.xlu1 %311, %v103_v28   ;;  %210 = vmatpush.msra.mxu0 %v143_v44  ;;  %v151_v13 = vld [vmem:[#allocation2 + $0x80] sm:$0xff]  ;;  %v437_v28 = vmov 0 }
  0x1c   :  { %312 = vset.pattern.permute.xlu2 %v350_v30  ;;  %230 = vmatpush.msra.mxu1 %v159_v45  ;;  %v167_v14 = vld [vmem:[#allocation2 + $0x100] sm:$0xff]  ;;  %v439_v30 = vmov 0 }
  0x1d   :  { %117 = vperm.xlu2 %312, %v115_v29   ;;  %250 = vmatpush.msra.mxu2 %v175_v46  ;;  %v183_v15 = vld [vmem:[#allocation2 + $0x180] sm:$0xff] }
  0x1e   :  { %270 = vmatpush.msra.mxu3 %v191_v47  ;;  %211 = vmatpush.msra.mxu0 %v142_v48  ;;  %v314_v38 = vld [vmem:[%s433_s2] ss:$0 sm:$0xff] }
  0x1f   :  { %231 = vmatpush.msra.mxu1 %v158_v49  ;;  %251 = vmatpush.msra.mxu2 %v174_v50 }
  0x20   :  { %271 = vmatpush.msra.mxu3 %v190_v51  ;;  %212 = vmatpush.msra.mxu0 %v141_v52 }
  0x21   :  { %232 = vmatpush.msra.mxu1 %v157_v53  ;;  %252 = vmatpush.msra.mxu2 %v173_v54 }
  0x22   :  { %272 = vmatpush.msra.mxu3 %v189_v55  ;;  %213 = vmatpush.msra.mxu0 %v140_v56 }
  0x23   :  { %233 = vmatpush.msra.mxu1 %v156_v57  ;;  %253 = vmatpush.msra.mxu2 %v172_v58 }
  0x24   :  { %273 = vmatpush.msra.mxu3 %v188_v59  ;;  %214 = vmatpush.msra.mxu0 %v139_v60 }
  0x25   :  { %234 = vmatpush.msra.mxu1 %v155_v61  ;;  %254 = vmatpush.msra.mxu2 %v171_v62 }
  0x26   :  { %274 = vmatpush.msra.mxu3 %v187_v63  ;;  %215 = vmatpush.msra.mxu0 %v138_v0 }
  0x27   :  { %235 = vmatpush.msra.mxu1 %v154_v1  ;;  %255 = vmatpush.msra.mxu2 %v170_v2 }
  0x28   :  { %275 = vmatpush.msra.mxu3 %v186_v3  ;;  %216 = vmatpush.msra.mxu0 %v137_v4 }
  0x29   :  { %236 = vmatpush.msra.mxu1 %v153_v5  ;;  %256 = vmatpush.msra.mxu2 %v169_v6 }
  0x2a   :  { %276 = vmatpush.msra.mxu3 %v185_v7  ;;  %217 = vmatpush.msra.mxu0 %v136_v8 }
  0x2b   :  { %237 = vmatpush.msra.mxu1 %v152_v9  ;;  %257 = vmatpush.msra.mxu2 %v168_v10 }
  0x2c   :  { %277 = vmatpush.msra.mxu3 %v184_v11  ;;  %218 = vmatpush.msra.mxu0 %v135_v12 }
  0x2d   :  { %238 = vmatpush.msra.mxu1 %v151_v13  ;;  %258 = vmatpush.msra.mxu2 %v167_v14 }
  0x2e   :  { %278 = vmatpush.msra.mxu3 %v183_v15 }
  0x64   :  { %v379_v16 = vpop.permute.xlu2 %81 }
  0x6e   :  { %v381_v21 = vpop.permute.xlu2 %93 }
  0x77   :  { %v118_v29 = vpop.permute.xlu2 %117 }
  0x79   :  { %v38_v17 = vpop.permute.xlu0 %37 }
  0x7a   :  { %vm39_vm2 = vcmp.eq.s32.totalorder %v32_v20, %v38_v17  ;;  %vm40_vm4 = vcmp.eq.s32.totalorder %v33_v22, %v38_v17  ;;  %vm41_vm7 = vcmp.eq.s32.totalorder %v34_v23, %v38_v17  ;;  %vm42_vm9 = vcmp.eq.s32.totalorder %v383_v25, %v38_v17 }
  0x7b   :  { %v58_v19 = vpop.permute.xlu1 %57 }
  0x7c   :  { %vm59_vm11 = vcmp.eq.s32.totalorder %v32_v20, %v58_v19  ;;  %vm60_vm13 = vcmp.eq.s32.totalorder %v33_v22, %v58_v19 }
  0x82   :  { %v46_v24 = vpop.permute.xlu0 %45 }
  0x83   :  { %vm47_vm0 = vcmp.eq.s32.totalorder %v32_v20, %v46_v24  ;;  %vm48_vm1 = vcmp.eq.s32.totalorder %v33_v22, %v46_v24  ;;  %vm49_vm3 = vcmp.eq.s32.totalorder %v34_v23, %v46_v24  ;;  %vm50_vm5 = vcmp.eq.s32.totalorder %v383_v25, %v46_v24 }
  0x84   :  { %v70_v26 = vpop.permute.xlu1 %69  ;;  %vm51_vm6 = vmor %vm39_vm2, %vm47_vm0  ;;  %vm61_vm0 = vcmp.eq.s32.totalorder %v34_v23, %v58_v19 }
  0x85   :  { %vm52_vm8 = vmor %vm40_vm4, %vm48_vm1  ;;  %vm71_vm15 = vcmp.eq.s32.totalorder %v32_v20, %v70_v26 }
  0x86   :  { %vm53_vm10 = vmor %vm41_vm7, %vm49_vm3  ;;  %vm95_vm3 = vcmp.eq.s32.totalorder %v32_v20, %v381_v21 }
  0x87   :  { %vm387_vm12 = vmor %vm42_vm9, %vm50_vm5  ;;  %vm83_vm5 = vcmp.eq.s32.totalorder %v32_v20, %v379_v16  ;;  %vm119_vm9 = vcmp.eq.s32.totalorder %v32_v20, %v118_v29 }
  0x88   :  { %v436_v27 = vsel %vm387_vm12, 4294967295, %v435_v27  ;;  %vm63_vm14 = vmor %vm51_vm6, %vm59_vm11  ;;  %vm72_vm6 = vcmp.eq.s32.totalorder %v33_v22, %v70_v26 }
  0x89   :  { %vm391_vm2 = vmor %vm52_vm8, %vm60_vm13  ;;  %vm62_vm8 = vcmp.eq.s32.totalorder %v383_v25, %v58_v19 }
  0x8a   :  { %v438_v28 = vsel %vm391_vm2, 4294967295, %v437_v28  ;;  %vm395_vm1 = vmor %vm53_vm10, %vm61_vm0  ;;  %vm441_vm2 = vnez %v436_v27 }
  0x8b   :  { %v440_v30 = vsel %vm395_vm1, 4294967295, %v439_v30  ;;  %vm75_vm4 = vmor %vm63_vm14, %vm71_vm15  ;;  %vm96_vm14 = vcmp.eq.s32.totalorder %v33_v22, %v381_v21  ;;  %vm444_vm15 = vnez %v438_v28 }
  0x8c   :  { %vm87_vm7 = vmor %vm75_vm4, %vm83_vm5 }
  0x8d   :  { %v106_v31 = vpop.permute.xlu1 %105  ;;  %vm99_vm11 = vmor %vm87_vm7, %vm95_vm3  ;;  %vm84_vm3 = vcmp.eq.s32.totalorder %v33_v22, %v379_v16 }
  0x8e   :  { %vm107_vm12 = vcmp.eq.s32.totalorder %v32_v20, %v106_v31  ;;  %vm404_vm10 = vmor %vm441_vm2, %vm62_vm8  ;;  %vm108_vm5 = vcmp.eq.s32.totalorder %v33_v22, %v106_v31 }
  0x8f   :  { %vm111_vm13 = vmor %vm99_vm11, %vm107_vm12  ;;  %v443_v32 = vsel %vm404_vm10, 4294967295, %v442_v32  ;;  %vm120_vm12 = vcmp.eq.s32.totalorder %v33_v22, %v118_v29  ;;  %vm73_vm11 = vcmp.eq.s32.totalorder %v34_v23, %v70_v26  ;;  %vm97_vm10 = vcmp.eq.s32.totalorder %v34_v23, %v381_v21 }
  0x90   :  { %vm123_vm0 = vmor %vm111_vm13, %vm119_vm9  ;;  %vm445_vm9 = vnez %v440_v30 }
  0x91   :  { %v289_v34 = vsel %vm123_vm0, 1.0, %v352_v33  ;;  %vm76_vm4 = vmor %vm444_vm15, %vm72_vm6  ;;  %vm85_vm0 = vcmp.eq.s32.totalorder %v34_v23, %v379_v16  ;;  %vm109_vm6 = vcmp.eq.s32.totalorder %v34_v23, %v106_v31 }
  0x92   :  { %219 = vmatmul.f32.vlgmr.msra.gmra.mxu0 %v289_v34  ;;  %vm88_vm7 = vmor %vm76_vm4, %vm84_vm3  ;;  %vm121_vm3 = vcmp.eq.s32.totalorder %v34_v23, %v118_v29  ;;  %vm74_vm4 = vcmp.eq.s32.totalorder %v383_v25, %v70_v26 }
  0x93   :  { %vm100_vm1 = vmor %vm88_vm7, %vm96_vm14 }
  0x94   :  { %vm112_vm2 = vmor %vm100_vm1, %vm108_vm5  ;;  %vm98_vm5 = vcmp.eq.s32.totalorder %v383_v25, %v381_v21 }
  0x95   :  { %vm124_vm8 = vmor %vm112_vm2, %vm120_vm12  ;;  %vm446_vm12 = vnez %v443_v32 }
  0x96   :  { %v290_v35 = vsel %vm124_vm8, 1.0, %v352_v33  ;;  %vm77_vm13 = vmor %vm445_vm9, %vm73_vm11  ;;  %vm86_vm11 = vcmp.eq.s32.totalorder %v383_v25, %v379_v16  ;;  %vm110_vm8 = vcmp.eq.s32.totalorder %v383_v25, %v106_v31 }
  0x97   :  { %239 = vmatmul.f32.vlgmr.msra.gmra.mxu1 %v290_v35  ;;  %vm89_vm15 = vmor %vm77_vm13, %vm85_vm0  ;;  %vm122_vm13 = vcmp.eq.s32.totalorder %v383_v25, %v118_v29 }
  0x98   :  { %vm101_vm7 = vmor %vm89_vm15, %vm97_vm10 }
  0x99   :  { %vm113_vm14 = vmor %vm101_vm7, %vm109_vm6 }
  0x9a   :  { %vm125_vm1 = vmor %vm113_vm14, %vm121_vm3 }
  0x9b   :  { %v291_v36 = vsel %vm125_vm1, 1.0, %v352_v33  ;;  %vm78_vm2 = vmor %vm446_vm12, %vm74_vm4 }
  0x9c   :  { %259 = vmatmul.f32.vlgmr.msra.gmra.mxu2 %v291_v36  ;;  %vm90_vm9 = vmor %vm78_vm2, %vm86_vm11 }
  0x9d   :  { %vm102_vm0 = vmor %vm90_vm9, %vm98_vm5 }
  0x9e   :  { %vm114_vm10 = vmor %vm102_vm0, %vm110_vm8 }
  0x9f   :  { %vm126_vm6 = vmor %vm114_vm10, %vm122_vm13 }
  0xa0   :  { %v292_v37 = vsel %vm126_vm6, 1.0, %v352_v33 }
  0xa1   :  { %279 = vmatmul.f32.vlgmr.msra.gmra.mxu3 %v292_v37 }
 0x10f   :  { %v220_v39 = vpop.f32.mrf.mxu0 }
 0x110   :  { %v221_v40 = vadd.f32 %v314_v38, %v220_v39 }
 0x114   :  { %v240_v41 = vpop.f32.mrf.mxu1 }
 0x115   :  { %v241_v42 = vadd.f32 %v240_v41, %v221_v40 }
 0x11f   :  { %v260_v43 = vpop.f32.mrf.mxu2 }
 0x120   :  { %v261_v44 = vadd.f32 %v260_v43, %v241_v42 }
 0x124   :  { %v280_v45 = vpop.f32.mrf.mxu3 }
 0x125   :  { %v281_v46 = vadd.f32 %v280_v45, %v261_v44 }
 0x127   :  { %283 = vst [vmem:[%s434_s3] sm:$0xff] %v281_v46 }
 0x128   :  { %288 = vsyncpa [#allocation3], 1 }

</bundles_post_ra>
